<compile_context>
chip_gen: v5e
topology: v5e:2x2
jax: 0.10.0
libtpu: 0.0.40
codegen_flags: <defaults>
</compile_context>

<pallas_src>
import functools

import jax
import jax.numpy as jnp
from jax import lax
from jax.experimental import pallas as pl
from jax.experimental.pallas import tpu as pltpu

LANES = 128

# Budget for the double-buffered g+t input windows (2 inputs x 2 buffers).
INPUT_VMEM_BUDGET = 8 << 20
# Budget for the (optional) double-buffered streamed-d window.
D_VMEM_BUDGET = 4 << 20
# Below this many elements, mean(log(d+1e-8)) is computed in plain JAX and d
# is not streamed through the kernel at all.
D_STREAM_THRESHOLD = 32768


def _round_up(x, m):
    return -(-x // m) * m


def _num_tensorcores():
    """Best-effort TensorCores-per-chip (1 on v5e/v6e, 2 on v7x)."""
    try:
        info = pltpu.get_tpu_info()
        for name in ("num_cores", "num_tensorcores", "tensorcore_count",
                     "cores_per_chip", "num_cores_per_chip", "core_count"):
            v = getattr(info, name, None)
            if isinstance(v, int) and v > 0:
                return max(1, min(int(v), 2))
    except Exception:
        pass
    try:
        kind = jax.devices()[0].device_kind.lower()
        if "7" in kind:           # TPU v7x: 2 TensorCores per chip
            return 2
    except Exception:
        pass
    return 1


_NUM_CORES_CACHE = None


def _cached_num_tensorcores():
    global _NUM_CORES_CACHE
    if _NUM_CORES_CACHE is None:
        _NUM_CORES_CACHE = _num_tensorcores()
    return _NUM_CORES_CACHE


def _to_lanes(x, pad_value):
    """Flatten row-major and reshape to (rows, 128).

    Pads only the ragged tail to the next multiple of 128 (no pad op at all
    when numel is already a multiple of 128)."""
    flat = x.reshape(-1)
    n = flat.shape[0]
    n_pad = _round_up(n, LANES)
    if n_pad != n:
        flat = jnp.pad(flat, (0, n_pad - n), constant_values=pad_value)
    return flat.reshape(n_pad // LANES, LANES), n


def _make_kernel(*, stream_d, nc, bpc, tile_m, tile_d, nb_g, nbd,
                 m_rows, md_rows):
    nb_total = nc * bpc
    g_partial_last = (m_rows % tile_m) != 0
    g_overflow = nb_total > nb_g
    d_partial_last = stream_d and ((md_rows % tile_d) != 0)
    d_overflow = stream_d and (nbd < nb_total)

    def kernel(*refs):
        if stream_d:
            g_ref, t_ref, d_ref, sse_out, log_out, acc_ref, lacc_ref = refs
        else:
            g_ref, t_ref, sse_out, acc_ref = refs
            d_ref = log_out = lacc_ref = None

        c = pl.program_id(0)        # TensorCore ("parallel") axis
        i = pl.program_id(1)        # streaming ("arbitrary") axis
        gb = i * nc + c             # interleaved global block index

        @pl.when(i == 0)
        def _():
            acc_ref[...] = jnp.zeros_like(acc_ref)
            if stream_d:
                lacc_ref[...] = jnp.zeros_like(lacc_ref)

        # ---- squared-error partial sums: fold tile to (8,128), pure VPU ----
        def g_step(masked):
            def body():
                diff = (g_ref[...].astype(jnp.float32)
                        - t_ref[...].astype(jnp.float32))
                sq = diff * diff
                if masked:
                    rows = gb * tile_m + lax.broadcasted_iota(
                        jnp.int32, (tile_m, LANES), 0)
                    sq = jnp.where(rows < m_rows, sq, 0.0)
                acc_ref[...] += jnp.sum(
                    sq.reshape(tile_m // 8, 8, LANES), axis=0)
            return body

        if g_partial_last:
            pl.when(gb < nb_g - 1)(g_step(False))   # steady state: no mask
            pl.when(gb == nb_g - 1)(g_step(True))   # ragged last block only
        elif g_overflow:
            pl.when(gb < nb_g)(g_step(False))       # skip clamped duplicates
        else:
            g_step(False)()                         # common case: no gating

        # ---- streamed log(d + 1e-8) partial sums (only when d is large) ----
        if stream_d:
            def d_step(masked):
                def body():
                    lg = jnp.log(d_ref[...].astype(jnp.float32)
                                 + jnp.float32(1e-8))
                    if masked:
                        drows = gb * tile_d + lax.broadcasted_iota(
                            jnp.int32, (tile_d, LANES), 0)
                        lg = jnp.where(drows < md_rows, lg, 0.0)
                    lacc_ref[...] += jnp.sum(
                        lg.reshape(tile_d // 8, 8, LANES), axis=0)
                return body

            if d_partial_last:
                pl.when(gb < nbd - 1)(d_step(False))
                pl.when(gb == nbd - 1)(d_step(True))
            elif d_overflow:
                pl.when(gb < nbd)(d_step(False))
            else:
                d_step(False)()

        # ---- per-core epilogue: one cross-lane reduce, full-block writes ----
        @pl.when(i == bpc - 1)
        def _():
            sse_out[...] = jnp.broadcast_to(jnp.sum(acc_ref[...]), (8, LANES))
            if stream_d:
                log_out[...] = jnp.broadcast_to(jnp.sum(lacc_ref[...]),
                                                (8, LANES))

    return kernel


@functools.partial(jax.jit, static_argnames=("input_budget_bytes",))
def generator_loss(g_outputs, targets, d_outputs, lambda_adv=0.001, *,
                   input_budget_bytes=INPUT_VMEM_BUDGET):
    assert g_outputs.shape == targets.shape
    lam = jnp.asarray(lambda_adv, jnp.float32)

    # ---- layout glue (reshape-only in the common numel % 128 == 0 case) ----
    g2d, n_g = _to_lanes(g_outputs, 0)        # pad 0 -> zero squared error
    t2d, _ = _to_lanes(targets, 0)
    m_rows = g2d.shape[0]

    stream_d = int(d_outputs.size) > D_STREAM_THRESHOLD
    if stream_d:
        d2d, n_d = _to_lanes(d_outputs, 1.0)  # pad 1.0 -> log == 0 exactly
        md_rows = d2d.shape[0]
        d_item = d2d.dtype.itemsize
    else:
        d2d, n_d, md_rows, d_item = None, int(d_outputs.size), 0, 0

    # ---- tile sizing: biggest lane-dense block within the VMEM budget ----
    g_item = g2d.dtype.itemsize
    t_item = t2d.dtype.itemsize
    max_rows = max(8, (input_budget_bytes // (2 * LANES * (g_item + t_item))
                       // 8) * 8)
    tile_m = min(max_rows, _round_up(m_rows, 8))
    nb_g = pl.cdiv(m_rows, tile_m)

    if stream_d:
        tile_d_cap = max(8, (D_VMEM_BUDGET // (2 * LANES * d_item) // 8) * 8)
        nb_req = max(nb_g, pl.cdiv(md_rows, tile_d_cap))
    else:
        nb_req = nb_g

    # Megacore split only on multi-TensorCore chips (v7x) and only when there
    # is more than one real block of work; nc=1 on v5e/v6e (pure overhead
    # otherwise).
    nc = _cached_num_tensorcores() if nb_req >= 2 else 1
    nc = max(1, min(nc, 2, nb_req))
    bpc = pl.cdiv(nb_req, nc)
    nb_total = nc * bpc

    if stream_d:
        tile_d = max(8, _round_up(pl.cdiv(md_rows, nb_total), 8))
        nbd = pl.cdiv(md_rows, tile_d)
    else:
        tile_d, nbd = 8, 0

    kernel = _make_kernel(stream_d=stream_d, nc=nc, bpc=bpc, tile_m=tile_m,
                          tile_d=tile_d, nb_g=nb_g, nbd=nbd,
                          m_rows=m_rows, md_rows=md_rows)

    def g_idx(c, i):
        return (jnp.minimum(i * nc + c, nb_g - 1), 0)

    in_specs = [pl.BlockSpec((tile_m, LANES), g_idx),   # g tiles (streamed)
                pl.BlockSpec((tile_m, LANES), g_idx)]   # t tiles (streamed)
    operands = [g2d, t2d]
    scratch = [pltpu.VMEM((8, LANES), jnp.float32)]     # SSE accumulator
    out_spec = pl.BlockSpec((8, LANES), lambda c, i: (c, 0))
    part_shape = jax.ShapeDtypeStruct((nc * 8, LANES), jnp.float32)

    if stream_d:
        def d_idx(c, i):
            return (jnp.minimum(i * nc + c, nbd - 1), 0)
        in_specs.append(pl.BlockSpec((tile_d, LANES), d_idx))
        operands.append(d2d)
        scratch.append(pltpu.VMEM((8, LANES), jnp.float32))  # log accumulator
        out_shape = (part_shape, part_shape)
        out_specs = [out_spec, out_spec]
    else:
        out_shape = part_shape
        out_specs = out_spec

    # Real double-buffered footprint + headroom.  Raises v5e's 16 MiB default
    # scoped VMEM when needed; stays far below v7x's 64 MiB per-TC physical.
    footprint = 2 * tile_m * LANES * (g_item + t_item)          # g,t (2 bufs)
    if stream_d:
        footprint += 2 * tile_d * LANES * d_item                # d   (2 bufs)
    footprint += 6 * 8 * LANES * 4                              # outs + accs
    vmem_limit = int(min(max(2 * footprint, 16 << 20), 40 << 20))

    outs = pl.pallas_call(
        kernel,
        out_shape=out_shape,
        grid_spec=pltpu.PrefetchScalarGridSpec(
            num_scalar_prefetch=0,
            grid=(nc, bpc),
            in_specs=in_specs,
            out_specs=out_specs,
            scratch_shapes=scratch,
        ),
        compiler_params=pltpu.CompilerParams(
            dimension_semantics=("parallel", "arbitrary"),
            vmem_limit_bytes=vmem_limit,
        ),
    )(*operands)

    # Tiny epilogue in plain JAX: combine per-core partials.
    if stream_d:
        out_sse, out_log = outs
        log_mean = jnp.sum(out_log[0::8, 0]) / n_d
    else:
        out_sse = outs
        log_mean = jnp.mean(jnp.log(d_outputs.astype(jnp.float32)
                                    + jnp.float32(1e-8)))

    sse_total = jnp.sum(out_sse[0::8, 0])
    return sse_total / n_g - lam * log_mean


def _reference(g, t, d, lambda_adv=0.001):
    g = g.astype(jnp.float32)
    t = t.astype(jnp.float32)
    d = d.astype(jnp.float32)
    loss1 = jnp.mean((g - t) ** 2)
    loss2 = lambda_adv * jnp.log(d + 1e-8)
    return jnp.mean(loss1 - loss2)


def _check(g, t, d, lam, **kw):
    out = jax.block_until_ready(generator_loss(g, t, d, lam, **kw))
    ref = _reference(g, t, d, lam)
    assert jnp.allclose(out, ref, rtol=1e-4, atol=1e-6), (out, ref)


if __name__ == "__main__":
    key = jax.random.PRNGKey(0)
    ks = jax.random.split(key, 12)

    # 1) Canonical small case (NCHW generator output vs target, per-sample D scores).
    g1 = jax.random.normal(ks[0], (2, 4, 16, 16), dtype=jnp.float32)
    t1 = jax.random.normal(ks[1], (2, 4, 16, 16), dtype=jnp.float32)
    d1 = jax.nn.sigmoid(jax.random.normal(ks[2], (2, 1), dtype=jnp.float32))
    _check(g1, t1, d1, 0.001)

    # 2) Ragged sizes (tail lane padding + partial-block row mask).
    g2 = jax.random.normal(ks[3], (3, 5, 7, 11), dtype=jnp.float32)
    t2 = jax.random.normal(ks[4], (3, 5, 7, 11), dtype=jnp.float32)
    d2 = jax.nn.sigmoid(jax.random.normal(ks[5], (3, 7), dtype=jnp.float32))
    _check(g2, t2, d2, 0.001)

    # 3) bf16 inputs stay bf16 on the wire; the f32 cast happens in-kernel.
    g3 = jax.random.normal(ks[6], (2, 4, 16, 16), dtype=jnp.bfloat16)
    t3 = jax.random.normal(ks[7], (2, 4, 16, 16), dtype=jnp.bfloat16)
    d3 = jax.nn.sigmoid(jax.random.normal(ks[8], (2, 1), dtype=jnp.float32))
    _check(g3, t3, d3, 0.001)

    # 4) Multi-block streaming with a deliberately ragged last block (a small
    #    forced budget -> tile_m=32 rows, 37 blocks, partial last block, and
    #    the interleaved megacore axis on multi-core chips).
    g4 = jax.random.normal(ks[9], (3, 5, 100, 100), dtype=jnp.float32)
    t4 = jax.random.normal(ks[10], (3, 5, 100, 100), dtype=jnp.float32)
    d4 = jax.nn.sigmoid(jax.random.normal(ks[11], (2, 1), dtype=jnp.float32))
    _check(g4, t4, d4, 0.001, input_budget_bytes=1 << 16)

    # 5) Large patch-discriminator scores: d is streamed through the kernel.
    g5 = jax.random.normal(ks[0], (2, 8, 64, 64), dtype=jnp.float32)
    t5 = jax.random.normal(ks[1], (2, 8, 64, 64), dtype=jnp.float32)
    d5 = jax.nn.sigmoid(jax.random.normal(ks[2], (2, 8, 64, 64), dtype=jnp.float32))
    _check(g5, t5, d5, 0.001)

    # 6) Streamed d with a ragged tail (exercises the d row mask).
    g6 = jax.random.normal(ks[3], (3, 5, 7, 11), dtype=jnp.float32)
    t6 = jax.random.normal(ks[4], (3, 5, 7, 11), dtype=jnp.float32)
    d6 = jax.nn.sigmoid(jax.random.normal(ks[5], (5, 81, 81), dtype=jnp.float32))
    _check(g6, t6, d6, 0.001)

    print("KERNEL_OK")
</pallas_src>

<mosaic_0001>
module attributes {stable_mosaic.version = 11 : i64} {
  func.func @kernel(%arg0: i32, %arg1: i32, %arg2: memref<16x128xf32, #tpu.memory_space<vmem>>, %arg3: memref<16x128xf32, #tpu.memory_space<vmem>>, %arg4: memref<8x128xf32, #tpu.memory_space<vmem>>, %arg5: memref<8x128xf32, #tpu.memory_space<vmem>>) attributes {dimension_semantics = [#tpu.dimension_semantics<parallel>, #tpu.dimension_semantics<arbitrary>], iteration_bounds = array<i64: 1, 1>, scalar_prefetch = 0 : i64, scratch_operands = 1 : i64, tpu.core_type = #tpu.core_type<tc>, window_params = [{transform_indices = @transform_0, window_bounds = array<i64: 16, 128>}, {transform_indices = @transform_1, window_bounds = array<i64: 16, 128>}, {transform_indices = @transform_2, window_bounds = array<i64: 8, 128>}]} {
    %c0_i32 = arith.constant 0 : i32
    %0 = arith.cmpi eq, %arg1, %c0_i32 : i32
    %1 = arith.extui %0 : i1 to i32
    %c0_i32_0 = arith.constant 0 : i32
    %2 = arith.cmpi ne, %1, %c0_i32_0 : i32
    scf.if %2 {
      %cst_10 = arith.constant 0.000000e+00 : f32
      %15 = vector.broadcast %cst_10 : f32 to vector<8x128xf32>
      %c0_11 = arith.constant 0 : index
      %c0_12 = arith.constant 0 : index
      %16 = vector.load %arg5[%c0_11, %c0_12] : memref<8x128xf32, #tpu.memory_space<vmem>>, vector<8x128xf32>
      tpu.vector_store %arg5[%c0_11, %c0_12], %15 {strides = array<i32>} : memref<8x128xf32, #tpu.memory_space<vmem>>, vector<8x128xf32>,
    } else {
    }
    %c0 = arith.constant 0 : index
    %c0_1 = arith.constant 0 : index
    %3 = vector.load %arg2[%c0, %c0_1] : memref<16x128xf32, #tpu.memory_space<vmem>>, vector<16x128xf32>
    %c0_2 = arith.constant 0 : index
    %c0_3 = arith.constant 0 : index
    %4 = vector.load %arg3[%c0_2, %c0_3] : memref<16x128xf32, #tpu.memory_space<vmem>>, vector<16x128xf32>
    %5 = arith.subf %3, %4 : vector<16x128xf32>
    %6 = arith.mulf %5, %5 : vector<16x128xf32>
    %c0_4 = arith.constant 0 : index
    %c0_5 = arith.constant 0 : index
    %7 = vector.load %arg5[%c0_4, %c0_5] : memref<8x128xf32, #tpu.memory_space<vmem>>, vector<8x128xf32>
    %8 = vector.shape_cast %6 : vector<16x128xf32> to vector<2x8x128xf32>
    %cst = arith.constant dense<0.000000e+00> : vector<8x128xf32>
    %9 = vector.multi_reduction <add>, %8, %cst [0] : vector<2x8x128xf32> to vector<8x128xf32>
    %10 = arith.addf %7, %9 : vector<8x128xf32>
    %c0_6 = arith.constant 0 : index
    %c0_7 = arith.constant 0 : index
    %11 = vector.load %arg5[%c0_6, %c0_7] : memref<8x128xf32, #tpu.memory_space<vmem>>, vector<8x128xf32>
    tpu.vector_store %arg5[%c0_6, %c0_7], %10 {strides = array<i32>} : memref<8x128xf32, #tpu.memory_space<vmem>>, vector<8x128xf32>,
    %c0_i32_8 = arith.constant 0 : i32
    %12 = arith.cmpi eq, %arg1, %c0_i32_8 : i32
    %13 = arith.extui %12 : i1 to i32
    %c0_i32_9 = arith.constant 0 : i32
    %14 = arith.cmpi ne, %13, %c0_i32_9 : i32
    scf.if %14 {
      %c0_10 = arith.constant 0 : index
      %c0_11 = arith.constant 0 : index
      %15 = vector.load %arg5[%c0_10, %c0_11] : memref<8x128xf32, #tpu.memory_space<vmem>>, vector<8x128xf32>
      %16 = vector.shape_cast %15 : vector<8x128xf32> to vector<1x8x128xf32>
      %cst_12 = arith.constant dense<0.000000e+00> : vector<1xf32>
      %17 = vector.multi_reduction <add>, %16, %cst_12 [1, 2] : vector<1x8x128xf32> to vector<1xf32>
      %18 = vector.shape_cast %17 : vector<1xf32> to vector<1x1x1xf32>
      %19 = vector.extract %18[0, 0, 0] : f32 from vector<1x1x1xf32>
      %20 = vector.broadcast %19 : f32 to vector<8x128xf32>
      %c0_13 = arith.constant 0 : index
      %c0_14 = arith.constant 0 : index
      %21 = vector.load %arg4[%c0_13, %c0_14] : memref<8x128xf32, #tpu.memory_space<vmem>>, vector<8x128xf32>
      tpu.vector_store %arg4[%c0_13, %c0_14], %20 {strides = array<i32>} : memref<8x128xf32, #tpu.memory_space<vmem>>, vector<8x128xf32>,
    } else {
    }
    return
  }
  func.func @transform_0(%arg0: i32, %arg1: i32) -> (i32, i32) {
    %c1_i32 = arith.constant 1 : i32
    %0 = arith.muli %arg1, %c1_i32 : i32
    %1 = arith.addi %0, %arg0 : i32
    %c0_i32 = arith.constant 0 : i32
    %2 = arith.minsi %1, %c0_i32 : i32
    %c0_i32_0 = arith.constant 0 : i32
    %c0_i32_1 = arith.constant 0 : i32
    return %2, %c0_i32_0 : i32, i32
  }
  func.func @transform_1(%arg0: i32, %arg1: i32) -> (i32, i32) {
    %c1_i32 = arith.constant 1 : i32
    %0 = arith.muli %arg1, %c1_i32 : i32
    %1 = arith.addi %0, %arg0 : i32
    %c0_i32 = arith.constant 0 : i32
    %2 = arith.minsi %1, %c0_i32 : i32
    %c0_i32_0 = arith.constant 0 : i32
    %c0_i32_1 = arith.constant 0 : i32
    return %2, %c0_i32_0 : i32, i32
  }
  func.func @transform_2(%arg0: i32, %arg1: i32) -> (i32, i32) {
    %c0_i32 = arith.constant 0 : i32
    %c0_i32_0 = arith.constant 0 : i32
    return %arg0, %c0_i32 : i32, i32
  }
}

</mosaic_0001>

<bundles_post_ra>
// kernel: generator_loss.1
= control target key start
LH: loop header
LB: loop body
LE: loop exit
PB: predicated region body
PF: predicated region fallthrough
CT: control target
= control target key end

     0   :  { %s155_s0 = inlined_call_operand.vmem [shape: f32[16,128], index: 0, kind: input, shape index: {}]   ;;  %s156_s1 = inlined_call_operand.vmem [shape: f32[16,128], index: 1, kind: input, shape index: {}]   ;;  %s157_s2 = inlined_call_operand.vmem [shape: f32[8,128], index: 2, kind: output, shape index: {}]  }
   0x1   :  { %v80_v0 = vld [vmem:[%s155_s0] sm:$0xff]  ;;  %v81_v1 = vld [vmem:[%s155_s0 + $0x8] sm:$0xff] }
   0x2   :  { %v82_v2 = vld [vmem:[%s156_s1] sm:$0xff]  ;;  %v83_v3 = vld [vmem:[%s156_s1 + $0x8] sm:$0xff] }
   0x3   :  { %v84_v4 = vsub.f32 %v80_v0, %v82_v2  ;;  %v85_v5 = vsub.f32 %v81_v1, %v83_v3 }
   0x5   :  { %v86_v6 = vmul.f32 %v84_v4, %v84_v4  ;;  %v87_v7 = vmul.f32 %v85_v5, %v85_v5 }
   0x7   :  { %v89_v8 = vadd.f32 %v87_v7, %v86_v6 }
   0x9   :  { %96 = vadd.xlane.f32.xlu0 %v89_v8 }
  0x7c   :  { %v97_v9 = vpop.xlane.xlu0 %96 }
  0x7d   :  { %v98_v10 = vrot.slane %v97_v9, 4 }
  0x7f   :  { %v99_v11 = vadd.f32 %v98_v10, %v97_v9 }
  0x81   :  { %v100_v12 = vrot.slane %v99_v11, 2 }
  0x83   :  { %v101_v13 = vadd.f32 %v100_v12, %v99_v11 }
  0x85   :  { %v102_v14 = vrot.slane %v101_v13, 1 }
  0x87   :  { %v103_v15 = vadd.f32 %v102_v14, %v101_v13 }
  0x89   :  { %123 = vpush %v103_v15 }
  0xba   :  { %s124_s0 = spop %123 }
  0xbb   :  { %v105_v16 = vstv %s124_s0 }
  0xbc   :  { %106 = vst [vmem:[%s157_s2] sm:$0xff] %v105_v16 }

</bundles_post_ra>
